<compile_context>
chip_gen: v5e
topology: v5e:2x2
jax: 0.10.0
libtpu: 0.0.40
codegen_flags: <defaults>
</compile_context>

<pallas_src>
import numpy as np
import jax
import jax.numpy as jnp
from jax.experimental import pallas as pl
from jax.experimental.pallas import tpu as pltpu

_LANES = 128
_MAX_TILE_ROWS = 1024          # streaming-reduction tile: (1024, 128) f32 = 512 KiB per stream
_MAX_OVERLAP_LANE_TILE = 2048  # contraction tile for the pairwise-overlap matmul
_EPS = 1e-6


def _cdiv(a, b):
    return -(-a // b)


def _round_up(x, m):
    return _cdiv(x, m) * m


def _pick_row_tile(rows):
    # Biggest tile that fits comfortably; for small inputs the block covers the full array.
    return min(_MAX_TILE_ROWS, _round_up(max(rows, 1), 8))


# ----------------------------------------------------------------------------
# Kernel A: global masked dice sums.
#   out = [sum(a*b*c), sum(a*c), sum(b*c)]
# VMEM (3, tile_r, 128) accumulator; SMEM (3,) finalize at the last grid step.
# ----------------------------------------------------------------------------
def _global_dice_kernel(a_ref, b_ref, c_ref, o_ref, acc_ref):
    r = pl.program_id(0)

    @pl.when(r == 0)
    def _():
        acc_ref[...] = jnp.zeros_like(acc_ref)

    a = a_ref[...]
    b = b_ref[...]
    c = c_ref[...]
    ac = a * c
    acc_ref[0] += ac * b
    acc_ref[1] += ac
    acc_ref[2] += b * c

    @pl.when(r == pl.num_programs(0) - 1)
    def _():
        o_ref[0] = jnp.sum(acc_ref[0])
        o_ref[1] = jnp.sum(acc_ref[1])
        o_ref[2] = jnp.sum(acc_ref[2])


def masked_triple_sums(a, b, c):
    """Returns f32[3] = [sum(a*b*c), sum(a*c), sum(b*c)] via one streaming Pallas pass."""
    a = a.astype(jnp.float32).reshape(-1)
    b = b.astype(jnp.float32).reshape(-1)
    c = c.astype(jnp.float32).reshape(-1)
    n = a.shape[0]
    rows = _cdiv(n, _LANES)
    tile_r = _pick_row_tile(rows)
    rows_p = _round_up(rows, tile_r)
    n_pad = rows_p * _LANES
    if n_pad != n:
        a = jnp.pad(a, (0, n_pad - n))
        b = jnp.pad(b, (0, n_pad - n))
        c = jnp.pad(c, (0, n_pad - n))
    a2 = a.reshape(rows_p, _LANES)
    b2 = b.reshape(rows_p, _LANES)
    c2 = c.reshape(rows_p, _LANES)

    spec = pl.BlockSpec((tile_r, _LANES), lambda r: (r, 0))
    return pl.pallas_call(
        _global_dice_kernel,
        out_shape=jax.ShapeDtypeStruct((3,), jnp.float32),
        grid_spec=pltpu.PrefetchScalarGridSpec(
            num_scalar_prefetch=0,
            grid=(rows_p // tile_r,),
            in_specs=[spec, spec, spec],
            out_specs=pl.BlockSpec(memory_space=pltpu.MemorySpace.SMEM),
            scratch_shapes=[pltpu.VMEM((3, tile_r, _LANES), jnp.float32)]),
        compiler_params=pltpu.CompilerParams(dimension_semantics=("arbitrary",)),
    )(a2, b2, c2)


def dice_loss(pred, gt, mask, eps=_EPS):
    """DiceLoss (loss/dice_loss.py::DiceLoss)."""
    if pred.ndim == 4:
        pred = pred[:, 0, :, :]
        gt = gt[:, 0, :, :]
    s = masked_triple_sums(pred, gt, mask)
    return 1.0 - 2.0 * s[0] / (s[1] + s[2] + eps)


# ----------------------------------------------------------------------------
# Kernel C: pairwise instance-overlap matrix on the MXU.
#   P_aug (K+1 rows: pred maps + ones) @ G_augT (L+1 cols: gt maps + ones)
#   -> M[i,j]=|p_i ∩ g_j|, M[i,L]=|p_i|, M[K,j]=|g_j|.  One call + one device_get per image
#   replaces K*L per-pair reduction launches and host syncs.
# ----------------------------------------------------------------------------
def _overlap_kernel(p_ref, g_ref, o_ref, acc_ref):
    k = pl.program_id(0)

    @pl.when(k == 0)
    def _():
        acc_ref[...] = jnp.zeros_like(acc_ref)

    acc_ref[...] += jnp.dot(p_ref[...], g_ref[...],
                            preferred_element_type=jnp.float32)

    @pl.when(k == pl.num_programs(0) - 1)
    def _():
        o_ref[...] = acc_ref[...]


def _pairwise_overlap_matrix(p_maps, g_maps):
    K, L = len(p_maps), len(g_maps)
    HW = p_maps[0].size
    hw_tile = min(_MAX_OVERLAP_LANE_TILE, _round_up(HW, _LANES))
    hw_p = _round_up(HW, hw_tile)
    KP = _round_up(K + 1, 16)
    LP = _round_up(L + 1, _LANES)

    p_np = np.zeros((KP, hw_p), np.float32)
    for i, m in enumerate(p_maps):
        p_np[i, :HW] = m.reshape(-1)
    p_np[K, :HW] = 1.0
    gT_np = np.zeros((hw_p, LP), np.float32)
    for j, m in enumerate(g_maps):
        gT_np[:HW, j] = m.reshape(-1)
    gT_np[:HW, L] = 1.0

    # {0,1} maps are exact in bf16 -> half the HBM bytes, exact integer counts in f32 accum.
    p_dev = jnp.asarray(p_np, dtype=jnp.bfloat16)
    g_dev = jnp.asarray(gT_np, dtype=jnp.bfloat16)

    return pl.pallas_call(
        _overlap_kernel,
        out_shape=jax.ShapeDtypeStruct((KP, LP), jnp.float32),
        grid_spec=pltpu.PrefetchScalarGridSpec(
            num_scalar_prefetch=0,
            grid=(hw_p // hw_tile,),
            in_specs=[pl.BlockSpec((KP, hw_tile), lambda k: (0, k)),
                      pl.BlockSpec((hw_tile, LP), lambda k: (k, 0))],
            out_specs=pl.BlockSpec((KP, LP), lambda k: (0, 0)),
            scratch_shapes=[pltpu.VMEM((KP, LP), jnp.float32)]),
        compiler_params=pltpu.CompilerParams(dimension_semantics=("arbitrary",)),
    )(p_dev, g_dev)


def _match_matrices(pred_maps_batch, gt_maps_batch, iou_thresh):
    """Bool (K, L) match matrix per image; single host transfer for all overlap matrices."""
    jobs = []
    for b, (pm, gm) in enumerate(zip(pred_maps_batch, gt_maps_batch)):
        if len(pm) and len(gm):
            jobs.append((b, len(pm), len(gm), _pairwise_overlap_matrix(pm, gm)))
    host_ms = jax.device_get([j[3] for j in jobs]) if jobs else []

    match = [np.zeros((len(pm), len(gm)), dtype=bool)
             for pm, gm in zip(pred_maps_batch, gt_maps_batch)]
    for (b, K, L, _), m in zip(jobs, host_ms):
        m = np.asarray(m, np.float32)
        overlap = m[:K, :L]
        psum = m[:K, L:L + 1]   # |p_i| >= 1 (connected components are never empty)
        gsum = m[K:K + 1, :L]   # |g_j| >= 1
        iou = np.maximum(overlap / psum, overlap / gsum)
        match[b] = iou > iou_thresh
    return match


# ----------------------------------------------------------------------------
# Kernel B: batched per-pair dice sums with fused instance-map products.
# For pair p (instance maps u, v in {0,1}):
#   s0 = sum(pred*gt*mask*u), s1 = sum(pred*mask*u), s2 = sum(gt*mask*v)
# which covers matched (u=p_i&g_j, v=g_j), unmatched-gt (u=v=g_j) and unmatched-pred (u=v=p_i)
# cases of the reference exactly.  Grid = (num_pairs, row_tiles); pred/gt/mask are indexed per
# pair by image id via scalar prefetch.
# ----------------------------------------------------------------------------
def _pair_dice_kernel(img_ref, pred_ref, gt_ref, mask_ref, u_ref, v_ref, o_ref, acc_ref):
    del img_ref  # only consumed by the index maps
    p = pl.program_id(0)
    r = pl.program_id(1)

    @pl.when(r == 0)
    def _():
        acc_ref[...] = jnp.zeros_like(acc_ref)

    pred = pred_ref[0]
    gt = gt_ref[0]
    mask = mask_ref[0]
    u = u_ref[0].astype(jnp.float32)
    v = v_ref[0].astype(jnp.float32)

    pmu = pred * mask * u
    acc_ref[0] += pmu * gt
    acc_ref[1] += pmu
    acc_ref[2] += gt * mask * v

    @pl.when(r == pl.num_programs(1) - 1)
    def _():
        base = p * 3
        o_ref[base] = jnp.sum(acc_ref[0])
        o_ref[base + 1] = jnp.sum(acc_ref[1])
        o_ref[base + 2] = jnp.sum(acc_ref[2])


def _pair_dice_sums(pred_nhw, gt_nhw, mask_nhw, pair_u, pair_v, pair_img):
    N, H, W = pred_nhw.shape
    HW = H * W
    rows = _cdiv(HW, _LANES)
    tile_r = _pick_row_tile(rows)
    rows_p = _round_up(rows, tile_r)
    hw_p = rows_p * _LANES
    P = len(pair_u)

    def prep(x):  # (N, H, W) f32 -> (N, rows_p, 128), padded once for all pairs
        x = x.reshape(N, HW).astype(jnp.float32)
        if hw_p != HW:
            x = jnp.pad(x, ((0, 0), (0, hw_p - HW)))
        return x.reshape(N, rows_p, _LANES)

    pred3 = prep(pred_nhw)
    gt3 = prep(gt_nhw)
    mask3 = prep(mask_nhw)

    u_np = np.zeros((P, hw_p), np.float32)
    v_np = np.zeros((P, hw_p), np.float32)
    for idx in range(P):
        u_np[idx, :HW] = pair_u[idx].reshape(-1)
        v_np[idx, :HW] = pair_v[idx].reshape(-1)
    u = jnp.asarray(u_np.reshape(P, rows_p, _LANES), dtype=jnp.bfloat16)
    v = jnp.asarray(v_np.reshape(P, rows_p, _LANES), dtype=jnp.bfloat16)
    img_ids = jnp.asarray(np.asarray(pair_img, np.int32))

    img_spec = pl.BlockSpec((1, tile_r, _LANES), lambda p, r, img: (img[p], r, 0))
    map_spec = pl.BlockSpec((1, tile_r, _LANES), lambda p, r, img: (p, r, 0))

    sums = pl.pallas_call(
        _pair_dice_kernel,
        out_shape=jax.ShapeDtypeStruct((P * 3,), jnp.float32),
        grid_spec=pltpu.PrefetchScalarGridSpec(
            num_scalar_prefetch=1,
            grid=(P, rows_p // tile_r),
            in_specs=[img_spec, img_spec, img_spec, map_spec, map_spec],
            out_specs=pl.BlockSpec(memory_space=pltpu.MemorySpace.SMEM),
            scratch_shapes=[pltpu.VMEM((3, tile_r, _LANES), jnp.float32)]),
        compiler_params=pltpu.CompilerParams(
            dimension_semantics=("arbitrary", "arbitrary")),
    )(img_ids, pred3, gt3, mask3, u, v)
    return sums.reshape(P, 3)


# ----------------------------------------------------------------------------
# Host-side connected components (stand-in for scipy.ndimage.label, 4-connectivity);
# the original also labels on CPU (tensor.cpu().numpy()).
# ----------------------------------------------------------------------------
def _connected_components(binary_np):
    H, W = binary_np.shape
    labels = np.zeros((H, W), dtype=np.int32)
    count = 0
    for y in range(H):
        for x in range(W):
            if binary_np[y, x] and labels[y, x] == 0:
                count += 1
                stack = [(y, x)]
                labels[y, x] = count
                while stack:
                    cy, cx = stack.pop()
                    for dy, dx in ((1, 0), (-1, 0), (0, 1), (0, -1)):
                        ny, nx = cy + dy, cx + dx
                        if 0 <= ny < H and 0 <= nx < W and binary_np[ny, nx] and labels[ny, nx] == 0:
                            labels[ny, nx] = count
                            stack.append((ny, nx))
    return labels, count


# ----------------------------------------------------------------------------
# InstanceDiceLoss (loss/dice_loss.py::InstanceDiceLoss)
# ----------------------------------------------------------------------------
class InstanceDiceLoss:
    def __init__(self, threshold=0.3, iou_thresh=0.2, max_regions=100, eps=_EPS):
        self.threshold = threshold
        self.iou_thresh = iou_thresh
        self.max_regions = max_regions
        self.eps = eps

    def label_batch(self, binary_np_batch):
        """(N, 1, H, W) bool -> list (len N) of lists of (H, W) bool instance maps."""
        out = []
        for b in range(binary_np_batch.shape[0]):
            lab, cnt = _connected_components(binary_np_batch[b, 0])
            cnt = min(self.max_regions, cnt)
            out.append([lab == idx for idx in range(1, cnt + 1)])
        return out

    def __call__(self, pred, gt, mask, gt_instance_maps=None):
        # pred, gt: (N,1,H,W); mask: (N,H,W). Matching structure is host-side and data-dependent
        # (like the reference's CPU labeling); all reductions run in Pallas, no per-pair syncs.
        pred_np = np.asarray(jax.device_get(pred))
        pred_maps = self.label_batch(pred_np > self.threshold)
        if gt_instance_maps is None:
            gt_np = np.asarray(jax.device_get(gt))
            gt_instance_maps = self.label_batch(gt_np > 0)
        gt_maps = gt_instance_maps

        # One MXU matmul per image for the full IoU matrix; single device_get for all images.
        match = _match_matrices(pred_maps, gt_maps, self.iou_thresh)

        # Build per-pair {0,1} map stacks on the host.
        pair_u, pair_v, pair_img = [], [], []
        for b in range(len(pred_maps)):
            pm, gm, mt = pred_maps[b], gt_maps[b], match[b]
            K, L = len(pm), len(gm)
            for j in range(L):
                hits = np.nonzero(mt[:, j])[0]
                if hits.size:
                    for i in hits:                      # matched pair
                        pair_u.append(np.logical_and(pm[i], gm[j]))
                        pair_v.append(gm[j])
                        pair_img.append(b)
                else:                                   # gt instance with no match
                    pair_u.append(gm[j])
                    pair_v.append(gm[j])
                    pair_img.append(b)
            if K:
                matched_any = mt.any(axis=1)
                for i in range(K):
                    if not matched_any[i]:              # pred instance never matched
                        pair_u.append(pm[i])
                        pair_v.append(pm[i])
                        pair_img.append(b)

        if not pair_u:
            # TODO(synk): torch.stack([]) in the reference would raise; return 0 instead.
            return jnp.float32(0.0)

        sums = _pair_dice_sums(pred[:, 0], gt[:, 0], mask, pair_u, pair_v, pair_img)
        dice = 1.0 - 2.0 * sums[:, 0] / (sums[:, 1] + sums[:, 2] + self.eps)
        # mean over images of (sum of that image's pair losses) == sum(all) / #images with pairs
        n_images_with_pairs = len(set(pair_img))
        return jnp.sum(dice) / float(n_images_with_pairs)


# ----------------------------------------------------------------------------
# AdaptiveInstanceDiceLoss
# ----------------------------------------------------------------------------
class AdaptiveInstanceDiceLoss:
    def __init__(self, iou_thresh=0.2, thresh=0.3):
        self.main_instance_loss = InstanceDiceLoss(threshold=thresh, iou_thresh=iou_thresh)
        self.binary_instance_loss = InstanceDiceLoss(threshold=thresh, iou_thresh=iou_thresh)
        # nn.Parameter(torch.ones(1)) for each weight — deterministic init.
        self.weights = dict(
            main=jnp.ones((1,), jnp.float32),
            thresh=jnp.ones((1,), jnp.float32),
            main_instance=jnp.ones((1,), jnp.float32),
            binary_instance=jnp.ones((1,), jnp.float32),
        )

    @staticmethod
    def partial_loss(weight, loss):
        return loss / weight + 0.5 * jnp.log(weight)

    def __call__(self, pred, target):
        main_loss = dice_loss(pred["prob"], target["gt"], target["mask"])
        binary_loss = dice_loss(pred["binary"], target["gt"], target["mask"])

        # Label gt once, share between both instance losses (same thresholding in both).
        gt_np = np.asarray(jax.device_get(target["gt"]))
        gt_instance_maps = self.main_instance_loss.label_batch(gt_np > 0)

        main_instance_loss = self.main_instance_loss(
            pred["prob"], target["gt"], target["mask"], gt_instance_maps=gt_instance_maps)
        binary_instance_loss = self.binary_instance_loss(
            pred["binary"], target["gt"], target["mask"], gt_instance_maps=gt_instance_maps)

        loss = (self.partial_loss(self.weights["main"], main_loss)
                + self.partial_loss(self.weights["thresh"], binary_loss)
                + self.partial_loss(self.weights["main_instance"], main_instance_loss)
                + self.partial_loss(self.weights["binary_instance"], binary_instance_loss))

        metrics = dict(
            main_loss=main_loss,
            binary_loss=binary_loss,
            main_instance_loss=main_instance_loss,
            binary_instance_loss=binary_instance_loss,
        )
        metrics.update(self.weights)
        return loss, metrics


if __name__ == "__main__":
    N, C, H, W = 2, 1, 16, 16
    key = jax.random.PRNGKey(0)
    k1, k2 = jax.random.split(key)

    # Deterministic ground truth with a few connected components per image.
    gt_np = np.zeros((N, C, H, W), dtype=np.float32)
    gt_np[0, 0, 2:6, 2:7] = 1.0
    gt_np[0, 0, 9:14, 8:14] = 1.0
    gt_np[1, 0, 3:8, 3:12] = 1.0
    gt_np[1, 0, 11:15, 1:5] = 1.0
    gt = jnp.asarray(gt_np)

    noise_prob = jax.random.uniform(k1, (N, C, H, W), dtype=jnp.float32)
    noise_bin = jax.random.uniform(k2, (N, C, H, W), dtype=jnp.float32)
    prob = jnp.clip(0.7 * gt + 0.3 * noise_prob, 0.0, 1.0)
    binary = jnp.clip(0.7 * gt + 0.3 * noise_bin, 0.0, 1.0)
    mask = jnp.ones((N, H, W), dtype=jnp.float32)

    pred = dict(prob=prob, binary=binary)
    target = dict(gt=gt, mask=mask)

    model = AdaptiveInstanceDiceLoss(iou_thresh=0.2, thresh=0.3)
    loss, metrics = model(pred, target)

    jax.block_until_ready(loss)
    for v in metrics.values():
        jax.block_until_ready(v)
    print("KERNEL_OK")
</pallas_src>

<mosaic_0001>
module attributes {stable_mosaic.version = 11 : i64} {
  func.func @_global_dice_kernel(%arg0: i32, %arg1: memref<8x128xf32, #tpu.memory_space<vmem>>, %arg2: memref<8x128xf32, #tpu.memory_space<vmem>>, %arg3: memref<8x128xf32, #tpu.memory_space<vmem>>, %arg4: memref<3xf32, #tpu.memory_space<smem>>, %arg5: memref<3x8x128xf32, #tpu.memory_space<vmem>>) attributes {dimension_semantics = [#tpu.dimension_semantics<arbitrary>], iteration_bounds = array<i64: 1>, scalar_prefetch = 0 : i64, scratch_operands = 1 : i64, tpu.core_type = #tpu.core_type<tc>, window_params = [{transform_indices = @transform_0, window_bounds = array<i64: 8, 128>}, {transform_indices = @transform_1, window_bounds = array<i64: 8, 128>}, {transform_indices = @transform_2, window_bounds = array<i64: 8, 128>}, {transform_indices = @transform_3, window_bounds = array<i64: 3>}]} {
    %c0_i32 = arith.constant 0 : i32
    %0 = arith.cmpi eq, %arg0, %c0_i32 : i32
    %1 = arith.extui %0 : i1 to i32
    %c0_i32_0 = arith.constant 0 : i32
    %2 = arith.cmpi ne, %1, %c0_i32_0 : i32
    scf.if %2 {
      %cst = arith.constant 0.000000e+00 : f32
      %30 = vector.broadcast %cst : f32 to vector<3x8x128xf32>
      %c0_24 = arith.constant 0 : index
      %c0_25 = arith.constant 0 : index
      %c0_26 = arith.constant 0 : index
      %31 = vector.load %arg5[%c0_24, %c0_25, %c0_26] : memref<3x8x128xf32, #tpu.memory_space<vmem>>, vector<3x8x128xf32>
      tpu.vector_store %arg5[%c0_24, %c0_25, %c0_26], %30 {strides = array<i32>} : memref<3x8x128xf32, #tpu.memory_space<vmem>>, vector<3x8x128xf32>,
    } else {
    }
    %c0 = arith.constant 0 : index
    %c0_1 = arith.constant 0 : index
    %3 = vector.load %arg1[%c0, %c0_1] : memref<8x128xf32, #tpu.memory_space<vmem>>, vector<8x128xf32>
    %c0_2 = arith.constant 0 : index
    %c0_3 = arith.constant 0 : index
    %4 = vector.load %arg2[%c0_2, %c0_3] : memref<8x128xf32, #tpu.memory_space<vmem>>, vector<8x128xf32>
    %c0_4 = arith.constant 0 : index
    %c0_5 = arith.constant 0 : index
    %5 = vector.load %arg3[%c0_4, %c0_5] : memref<8x128xf32, #tpu.memory_space<vmem>>, vector<8x128xf32>
    %6 = arith.mulf %3, %5 : vector<8x128xf32>
    %c0_6 = arith.constant 0 : index
    %c0_7 = arith.constant 0 : index
    %c0_8 = arith.constant 0 : index
    %7 = vector.load %arg5[%c0_6, %c0_7, %c0_8] : memref<3x8x128xf32, #tpu.memory_space<vmem>>, vector<1x8x128xf32>
    %8 = vector.shape_cast %7 : vector<1x8x128xf32> to vector<8x128xf32>
    %9 = arith.mulf %6, %4 : vector<8x128xf32>
    %10 = arith.addf %8, %9 : vector<8x128xf32>
    %c0_9 = arith.constant 0 : index
    %c0_10 = arith.constant 0 : index
    %c0_11 = arith.constant 0 : index
    %11 = vector.load %arg5[%c0_9, %c0_10, %c0_11] : memref<3x8x128xf32, #tpu.memory_space<vmem>>, vector<1x8x128xf32>
    %12 = vector.shape_cast %11 : vector<1x8x128xf32> to vector<8x128xf32>
    %13 = vector.shape_cast %10 : vector<8x128xf32> to vector<1x8x128xf32>
    tpu.vector_store %arg5[%c0_9, %c0_10, %c0_11], %13 {strides = array<i32>} : memref<3x8x128xf32, #tpu.memory_space<vmem>>, vector<1x8x128xf32>,
    %c1 = arith.constant 1 : index
    %c0_12 = arith.constant 0 : index
    %c0_13 = arith.constant 0 : index
    %14 = vector.load %arg5[%c1, %c0_12, %c0_13] : memref<3x8x128xf32, #tpu.memory_space<vmem>>, vector<1x8x128xf32>
    %15 = vector.shape_cast %14 : vector<1x8x128xf32> to vector<8x128xf32>
    %16 = arith.addf %15, %6 : vector<8x128xf32>
    %c1_14 = arith.constant 1 : index
    %c0_15 = arith.constant 0 : index
    %c0_16 = arith.constant 0 : index
    %17 = vector.load %arg5[%c1_14, %c0_15, %c0_16] : memref<3x8x128xf32, #tpu.memory_space<vmem>>, vector<1x8x128xf32>
    %18 = vector.shape_cast %17 : vector<1x8x128xf32> to vector<8x128xf32>
    %19 = vector.shape_cast %16 : vector<8x128xf32> to vector<1x8x128xf32>
    tpu.vector_store %arg5[%c1_14, %c0_15, %c0_16], %19 {strides = array<i32>} : memref<3x8x128xf32, #tpu.memory_space<vmem>>, vector<1x8x128xf32>,
    %c2 = arith.constant 2 : index
    %c0_17 = arith.constant 0 : index
    %c0_18 = arith.constant 0 : index
    %20 = vector.load %arg5[%c2, %c0_17, %c0_18] : memref<3x8x128xf32, #tpu.memory_space<vmem>>, vector<1x8x128xf32>
    %21 = vector.shape_cast %20 : vector<1x8x128xf32> to vector<8x128xf32>
    %22 = arith.mulf %4, %5 : vector<8x128xf32>
    %23 = arith.addf %21, %22 : vector<8x128xf32>
    %c2_19 = arith.constant 2 : index
    %c0_20 = arith.constant 0 : index
    %c0_21 = arith.constant 0 : index
    %24 = vector.load %arg5[%c2_19, %c0_20, %c0_21] : memref<3x8x128xf32, #tpu.memory_space<vmem>>, vector<1x8x128xf32>
    %25 = vector.shape_cast %24 : vector<1x8x128xf32> to vector<8x128xf32>
    %26 = vector.shape_cast %23 : vector<8x128xf32> to vector<1x8x128xf32>
    tpu.vector_store %arg5[%c2_19, %c0_20, %c0_21], %26 {strides = array<i32>} : memref<3x8x128xf32, #tpu.memory_space<vmem>>, vector<1x8x128xf32>,
    %c0_i32_22 = arith.constant 0 : i32
    %27 = arith.cmpi eq, %arg0, %c0_i32_22 : i32
    %28 = arith.extui %27 : i1 to i32
    %c0_i32_23 = arith.constant 0 : i32
    %29 = arith.cmpi ne, %28, %c0_i32_23 : i32
    scf.if %29 {
      %c0_24 = arith.constant 0 : index
      %c0_25 = arith.constant 0 : index
      %c0_26 = arith.constant 0 : index
      %30 = vector.load %arg5[%c0_24, %c0_25, %c0_26] : memref<3x8x128xf32, #tpu.memory_space<vmem>>, vector<1x8x128xf32>
      %31 = vector.shape_cast %30 : vector<1x8x128xf32> to vector<8x128xf32>
      %32 = vector.shape_cast %31 : vector<8x128xf32> to vector<1x8x128xf32>
      %cst = arith.constant dense<0.000000e+00> : vector<1xf32>
      %33 = vector.multi_reduction <add>, %32, %cst [1, 2] : vector<1x8x128xf32> to vector<1xf32>
      %34 = vector.shape_cast %33 : vector<1xf32> to vector<1x1x1xf32>
      %35 = vector.extract %34[0, 0, 0] : f32 from vector<1x1x1xf32>
      %c0_27 = arith.constant 0 : index
      %36 = memref.load %arg4[%c0_27] : memref<3xf32, #tpu.memory_space<smem>>
      memref.store %35, %arg4[%c0_27] : memref<3xf32, #tpu.memory_space<smem>>
      %c1_28 = arith.constant 1 : index
      %c0_29 = arith.constant 0 : index
      %c0_30 = arith.constant 0 : index
      %37 = vector.load %arg5[%c1_28, %c0_29, %c0_30] : memref<3x8x128xf32, #tpu.memory_space<vmem>>, vector<1x8x128xf32>
      %38 = vector.shape_cast %37 : vector<1x8x128xf32> to vector<8x128xf32>
      %39 = vector.shape_cast %38 : vector<8x128xf32> to vector<1x8x128xf32>
      %cst_31 = arith.constant dense<0.000000e+00> : vector<1xf32>
      %40 = vector.multi_reduction <add>, %39, %cst_31 [1, 2] : vector<1x8x128xf32> to vector<1xf32>
      %41 = vector.shape_cast %40 : vector<1xf32> to vector<1x1x1xf32>
      %42 = vector.extract %41[0, 0, 0] : f32 from vector<1x1x1xf32>
      %c1_32 = arith.constant 1 : index
      %43 = memref.load %arg4[%c1_32] : memref<3xf32, #tpu.memory_space<smem>>
      memref.store %42, %arg4[%c1_32] : memref<3xf32, #tpu.memory_space<smem>>
      %c2_33 = arith.constant 2 : index
      %c0_34 = arith.constant 0 : index
      %c0_35 = arith.constant 0 : index
      %44 = vector.load %arg5[%c2_33, %c0_34, %c0_35] : memref<3x8x128xf32, #tpu.memory_space<vmem>>, vector<1x8x128xf32>
      %45 = vector.shape_cast %44 : vector<1x8x128xf32> to vector<8x128xf32>
      %46 = vector.shape_cast %45 : vector<8x128xf32> to vector<1x8x128xf32>
      %cst_36 = arith.constant dense<0.000000e+00> : vector<1xf32>
      %47 = vector.multi_reduction <add>, %46, %cst_36 [1, 2] : vector<1x8x128xf32> to vector<1xf32>
      %48 = vector.shape_cast %47 : vector<1xf32> to vector<1x1x1xf32>
      %49 = vector.extract %48[0, 0, 0] : f32 from vector<1x1x1xf32>
      %c2_37 = arith.constant 2 : index
      %50 = memref.load %arg4[%c2_37] : memref<3xf32, #tpu.memory_space<smem>>
      memref.store %49, %arg4[%c2_37] : memref<3xf32, #tpu.memory_space<smem>>
    } else {
    }
    return
  }
  func.func @transform_0(%arg0: i32) -> (i32, i32) {
    %c0_i32 = arith.constant 0 : i32
    %c0_i32_0 = arith.constant 0 : i32
    return %arg0, %c0_i32 : i32, i32
  }
  func.func @transform_1(%arg0: i32) -> (i32, i32) {
    %c0_i32 = arith.constant 0 : i32
    %c0_i32_0 = arith.constant 0 : i32
    return %arg0, %c0_i32 : i32, i32
  }
  func.func @transform_2(%arg0: i32) -> (i32, i32) {
    %c0_i32 = arith.constant 0 : i32
    %c0_i32_0 = arith.constant 0 : i32
    return %arg0, %c0_i32 : i32, i32
  }
  func.func @transform_3(%arg0: i32) -> i32 {
    %c0_i32 = arith.constant 0 : i32
    %c0_i32_0 = arith.constant 0 : i32
    return %c0_i32 : i32
  }
}

</mosaic_0001>

<bundles_post_ra>
// kernel: tpu_custom_call.1
= control target key start
LH: loop header
LB: loop body
LE: loop exit
PB: predicated region body
PF: predicated region fallthrough
CT: control target
= control target key end

     0   :  { %8 = vsyncpa [#allocation4], 0  ;;  %s272_s0 = inlined_call_operand.hbm [shape: f32[8,128], index: 0, kind: input, shape index: {}]   ;;  %s273_s1 = inlined_call_operand.hbm [shape: f32[8,128], index: 1, kind: input, shape index: {}]   ;;  %s274_s2 = inlined_call_operand.hbm [shape: f32[8,128], index: 2, kind: input, shape index: {}]   ;;  %s275_s3 = inlined_call_operand.hbm [shape: f32[3], index: 3, kind: output, shape index: {}]  }
   0x1   :  { %9 = vsyncpa [#allocation7], 0  ;;  %s27_s14 = sshll.u32 %s273_s1, 4  ;;  %s28_s14 = int_to_ptr.hbm [resolvable:$true] %s27_s14 }
   0x2   :  { %10 = vsyncpa [#allocation5], 0  ;;  %s236_s15 = smov [#allocation6]   ;;  %s16_s19 = sshll.u32 %s272_s0, 4  ;;  %s17_s19 = int_to_ptr.hbm [resolvable:$true] %s16_s19 }
   0x3   :  { %s29_s16 = sshll.u32 %s236_s15, 4  ;;  %s237_s20 = smov [#allocation3]   ;;  %s30_s16 = int_to_ptr.vmem [resolvable:$true] %s29_s16 }
   0x4   :  { %32 = dma.hbm_to_vmem [thread:$0]  %s28_s14, 128, %s30_s16, [#allocation7]  }
   0x5   :  { %s18_s21 = sshll.u32 %s237_s20, 4  ;;  %s38_s24 = sshll.u32 %s274_s2, 4  ;;  %s19_s21 = int_to_ptr.vmem [resolvable:$true] %s18_s21  ;;  %s39_s24 = int_to_ptr.hbm [resolvable:$true] %s38_s24 }
   0x6   :  { %21 = dma.hbm_to_vmem [thread:$0]  %s17_s19, 128, %s19_s21, [#allocation4]  }
   0x7   :  { %s238_s1 = smov [#allocation8]  }
   0x8   :  { %s40_s25 = sshll.u32 %s238_s1, 4  ;;  %s41_s25 = int_to_ptr.vmem [resolvable:$true] %s40_s25 }
   0x9   :  { %43 = dma.hbm_to_vmem [thread:$0]  %s39_s24, 128, %s41_s25, [#allocation7]  }
   0xa   :  { %230 = dma.done.wait [#allocation4], 128  }
   0xb   :  { %231 = vsyncadd [#allocation4], 4294967168 }
   0xc   :  { %232 = dma.done.wait [#allocation7], 256  }
   0xd   :  { %233 = vsyncadd [#allocation7], 4294967040  ;;  %v63_v0 = vld [vmem:[#allocation3] sm:$0xff]  ;;  %v64_v1 = vld [vmem:[#allocation6] sm:$0xff]  ;;  %s124_s27 = sshll.u32 %s275_s3, 4  ;;  %s239_s30 = smov [#allocation9]   ;;  %s125_s27 = int_to_ptr.hbm [resolvable:$true] %s124_s27 }
   0xe   :  { %v65_v2 = vld [vmem:[#allocation8] sm:$0xff] }
   0xf   :  { %v66_v3 = vmul.f32 %v65_v2, %v63_v0  ;;  %v77_v4 = vmul.f32 %v65_v2, %v64_v1 }
  0x11   :  { %v68_v5 = vmul.f32 %v66_v3, %v64_v1  ;;  %108 = vadd.xlane.f32.xlu1 %v77_v4 }
  0x13   :  { %84 = vadd.xlane.f32.xlu0 %v68_v5 }
  0x1b   :  { %96 = vadd.xlane.f32.xlu0 %v66_v3 }
  0x84   :  { %v109_v6 = vpop.xlane.xlu1 %108 }
  0x85   :  { %v110_v8 = vrot.slane %v109_v6, 4 }
  0x86   :  { %v85_v7 = vpop.xlane.xlu0 %84 }
  0x87   :  { %v86_v9 = vrot.slane %v85_v7, 4  ;;  %v111_v11 = vadd.f32 %v110_v8, %v109_v6 }
  0x89   :  { %v87_v10 = vadd.f32 %v86_v9, %v85_v7  ;;  %v112_v14 = vrot.slane %v111_v11, 2 }
  0x8b   :  { %v88_v12 = vrot.slane %v87_v10, 2  ;;  %v113_v20 = vadd.f32 %v112_v14, %v111_v11 }
  0x8d   :  { %v89_v13 = vadd.f32 %v88_v12, %v87_v10  ;;  %v114_v23 = vrot.slane %v113_v20, 1 }
  0x8e   :  { %v97_v15 = vpop.xlane.xlu0 %96 }
  0x8f   :  { %v98_v16 = vrot.slane %v97_v15, 4  ;;  %v90_v17 = vrot.slane %v89_v13, 1  ;;  %v115_v26 = vadd.f32 %v114_v23, %v113_v20 }
  0x91   :  { %v99_v18 = vadd.f32 %v98_v16, %v97_v15  ;;  %v91_v19 = vadd.f32 %v90_v17, %v89_v13 }
  0x93   :  { %v100_v21 = vrot.slane %v99_v18, 2  ;;  %136 = vpush %v91_v19 }
  0x95   :  { %v101_v22 = vadd.f32 %v100_v21, %v99_v18 }
  0x97   :  { %v102_v24 = vrot.slane %v101_v22, 1 }
  0x99   :  { %v103_v25 = vadd.f32 %v102_v24, %v101_v22 }
  0x9b   :  { %138 = vpush %v103_v25 }
  0x9c   :  { %140 = vpush %v115_v26 }
  0xc4   :  { %s137_s0 = spop %136 }
  0xc5   :  { %94 = sst [smem:[#allocation9]] %s137_s0 }
  0xcc   :  { %s139_s28 = spop %138 }
  0xcd   :  { %106 = sst [smem:[#allocation9 + $0x1]] %s139_s28  ;;  %s141_s29 = spop %140 }
  0xce   :  { %118 = sst [smem:[#allocation9 + $0x2]] %s141_s29 }
  0xcf   :  { %127 = dma.smem_to_hbm %s239_s30, 16, %s125_s27, [#allocation5]  }
  0xd0   :  { %234 = dma.done.wait [#allocation5], 16  }
  0xd1   :  { %235 = vsyncadd [#allocation5], 4294967280 }
  0xd2   :  { %132 = sfence }
  0xd3   :  { %133 = vsyncpa [#allocation4], 1 }
  0xd4   :  { %134 = vsyncpa [#allocation7], 1 }
  0xd5   :  { %135 = vsyncpa [#allocation5], 1 }

</bundles_post_ra>
